<compile_context>
chip_gen: v7x
topology: tpu7x:2x2x1
jax: 0.10.0
libtpu: 0.0.40
codegen_flags: <defaults>
</compile_context>

<pallas_src>
import jax
import jax.numpy as jnp
from jax.experimental import pallas as pl
from jax.experimental.pallas import tpu as pltpu

HIDDEN = 16          # nodes_per_layer in BaseNet
TB_LANE_MAX = 4096   # max batch elements per grid step (lane axis, mult of 128)


def _cdiv(a, b):
    return (a + b - 1) // b


def _mlp_kernel(x_ref, wv_ref, wm_ref, o_ref):
    # x_ref : (1, TB)      batch tile, batch on the 128-lane axis
    # wv_ref: (16, 8)      packed vector params:
    #                      col0=w1, col1=b1, col2=b2, col3=b3, col4=w4, col5=b4
    # wm_ref: (2, 16, 16)  [W2, W3] in torch (out, in) orientation
    # o_ref : (1, TB)
    x = x_ref[...]                                   # (1, TB) f32
    wv = wv_ref[...]                                 # (16, 8) f32
    w1 = wv[:, 0:1]                                  # (16, 1)
    b1 = wv[:, 1:2]
    b2 = wv[:, 2:3]
    b3 = wv[:, 3:4]
    w4 = wv[:, 4:5]                                  # (16, 1) == W4^T
    b4 = wv[0:1, 5:6]                                # (1, 1)

    # Layer 1: Linear(1, 16) + ReLU  -- outer product on the VPU (no MXU).
    h = jnp.maximum(w1 * x + b1, 0.0)                # (16, TB)

    # Layer 2: Linear(16, 16) + ReLU -- MXU, f32 accumulation.
    h = jnp.maximum(
        jnp.dot(wm_ref[0], h, preferred_element_type=jnp.float32) + b2, 0.0)

    # Layer 3: Linear(16, 16) + ReLU -- MXU, f32 accumulation.
    h = jnp.maximum(
        jnp.dot(wm_ref[1], h, preferred_element_type=jnp.float32) + b3, 0.0)

    # Layer 4: Linear(16, 1) -- VPU multiply + cross-sublane reduce (XLU).
    y = jnp.sum(w4 * h, axis=0, keepdims=True) + b4  # (1, TB)

    o_ref[...] = y.astype(o_ref.dtype)


def _pack_params(p):
    """Pack torch-oriented params into two small slabs for the kernel."""
    wv = jnp.zeros((HIDDEN, 8), jnp.float32)
    wv = wv.at[:, 0].set(p["W1"][:, 0])              # (16,1) -> col
    wv = wv.at[:, 1].set(p["b1"])
    wv = wv.at[:, 2].set(p["b2"])
    wv = wv.at[:, 3].set(p["b3"])
    wv = wv.at[:, 4].set(p["W4"][0, :])              # (1,16) -> col
    wv = wv.at[:, 5].set(jnp.full((HIDDEN,), p["b4"][0], jnp.float32))
    wm = jnp.stack([p["W2"], p["W3"]]).astype(jnp.float32)   # (2, 16, 16)
    return wv, wm


def _choose_tile(n):
    # Lane-dense tile: multiple of 128, large enough to amortize the ~0.35 us
    # per-step overhead, small enough that grids with N > 256 have >= 2 steps
    # (keeps both v7x TensorCores busy).  VMEM per step stays << 1 MiB even
    # with double-buffering, well under the 16/32 MiB scoped defaults.
    tb = 128 * _cdiv(n, 256)
    return max(128, min(TB_LANE_MAX, tb))


def basenet_forward(x, params):
    """x: (N, 1) float32.  params: torch-oriented W1..W4 (out,in), b1..b4."""
    N, in_f = x.shape
    assert in_f == 1 and N >= 1

    tb = _choose_tile(N)
    n_pad = _cdiv(N, tb) * tb

    # Wrapper-side layout plumbing: batch onto the lane axis, pad to tile.
    xt = jnp.zeros((1, n_pad), jnp.float32).at[:, :N].set(
        x.astype(jnp.float32).reshape(1, N))
    wv, wm = _pack_params(params)

    yt = pl.pallas_call(
        _mlp_kernel,
        out_shape=jax.ShapeDtypeStruct((1, n_pad), jnp.float32),
        grid_spec=pltpu.PrefetchScalarGridSpec(
            num_scalar_prefetch=0,
            grid=(n_pad // tb,),
            in_specs=[
                pl.BlockSpec((1, tb), lambda i: (0, i)),          # x tile
                pl.BlockSpec((HIDDEN, 8), lambda i: (0, 0)),      # packed vecs
                pl.BlockSpec((2, HIDDEN, HIDDEN),
                             lambda i: (0, 0, 0)),                # W2, W3
            ],
            out_specs=pl.BlockSpec((1, tb), lambda i: (0, i)),
        ),
        compiler_params=pltpu.CompilerParams(
            dimension_semantics=("parallel",)),
    )(xt, wv, wm)

    return yt[0, :N].reshape(N, 1).astype(x.dtype)


def init_params(key):
    """PyTorch Linear default init (U[-1/sqrt(fan_in), +]) in torch layout."""
    def linear(k, fan_in, fan_out):
        kw, kb = jax.random.split(k)
        bound = 1.0 / jnp.sqrt(jnp.float32(fan_in))
        w = jax.random.uniform(kw, (fan_out, fan_in), jnp.float32, -bound, bound)
        b = jax.random.uniform(kb, (fan_out,), jnp.float32, -bound, bound)
        return w, b

    k1, k2, k3, k4 = jax.random.split(key, 4)
    W1, b1 = linear(k1, 1, HIDDEN)
    W2, b2 = linear(k2, HIDDEN, HIDDEN)
    W3, b3 = linear(k3, HIDDEN, HIDDEN)
    W4, b4 = linear(k4, HIDDEN, 1)
    return dict(W1=W1, b1=b1, W2=W2, b2=b2, W3=W3, b3=b3, W4=W4, b4=b4)


def reference_forward(x, p):
    h = jnp.maximum(x @ p["W1"].T + p["b1"], 0.0)
    h = jnp.maximum(h @ p["W2"].T + p["b2"], 0.0)
    h = jnp.maximum(h @ p["W3"].T + p["b3"], 0.0)
    return h @ p["W4"].T + p["b4"]


if __name__ == "__main__":
    key = jax.random.PRNGKey(0)
    kx, kp = jax.random.split(key)

    N = 16  # small batch; x has shape (N, 1) as implied by Linear(1, 16)
    x = jax.random.normal(kx, (N, 1), jnp.float32)
    params = init_params(kp)

    y = basenet_forward(x, params)
    y = jax.block_until_ready(y)

    y_ref = reference_forward(x, params)
    assert y.shape == (N, 1)
    assert jnp.allclose(y, y_ref, atol=1e-5, rtol=1e-5)

    print("KERNEL_OK")
</pallas_src>

<mosaic_0001>
module attributes {stable_mosaic.version = 11 : i64} {
  func.func @_mlp_kernel(%arg0: i32, %arg1: memref<1x128xf32, #tpu.memory_space<vmem>>, %arg2: memref<16x8xf32, #tpu.memory_space<vmem>>, %arg3: memref<2x16x16xf32, #tpu.memory_space<vmem>>, %arg4: memref<1x128xf32, #tpu.memory_space<vmem>>) attributes {dimension_semantics = [#tpu.dimension_semantics<parallel>], iteration_bounds = array<i64: 1>, scalar_prefetch = 0 : i64, scratch_operands = 0 : i64, tpu.core_type = #tpu.core_type<tc>, window_params = [{transform_indices = @transform_0, window_bounds = array<i64: 1, 128>}, {pipeline_mode = #tpu.pipeline_mode<synchronous>, transform_indices = @transform_1, window_bounds = array<i64: 16, 8>}, {pipeline_mode = #tpu.pipeline_mode<synchronous>, transform_indices = @transform_2, window_bounds = array<i64: 2, 16, 16>}, {transform_indices = @transform_3, window_bounds = array<i64: 1, 128>}]} {
    %c0 = arith.constant 0 : index
    %c0_0 = arith.constant 0 : index
    %0 = vector.load %arg1[%c0, %c0_0] : memref<1x128xf32, #tpu.memory_space<vmem>>, vector<1x128xf32>
    %c0_1 = arith.constant 0 : index
    %c0_2 = arith.constant 0 : index
    %1 = vector.load %arg2[%c0_1, %c0_2] : memref<16x8xf32, #tpu.memory_space<vmem>>, vector<16x8xf32>
    %2 = vector.extract_strided_slice %1 {offsets = [0, 0], sizes = [16, 1], strides = [1, 1]} : vector<16x8xf32> to vector<16x1xf32>
    %3 = vector.extract_strided_slice %1 {offsets = [0, 1], sizes = [16, 1], strides = [1, 1]} : vector<16x8xf32> to vector<16x1xf32>
    %4 = vector.extract_strided_slice %1 {offsets = [0, 2], sizes = [16, 1], strides = [1, 1]} : vector<16x8xf32> to vector<16x1xf32>
    %5 = vector.extract_strided_slice %1 {offsets = [0, 3], sizes = [16, 1], strides = [1, 1]} : vector<16x8xf32> to vector<16x1xf32>
    %6 = vector.extract_strided_slice %1 {offsets = [0, 4], sizes = [16, 1], strides = [1, 1]} : vector<16x8xf32> to vector<16x1xf32>
    %7 = vector.extract_strided_slice %1 {offsets = [0, 5], sizes = [1, 1], strides = [1, 1]} : vector<16x8xf32> to vector<1x1xf32>
    %8 = vector.broadcast %2 : vector<16x1xf32> to vector<16x128xf32>
    %9 = vector.broadcast %0 : vector<1x128xf32> to vector<16x128xf32>
    %10 = arith.mulf %8, %9 : vector<16x128xf32>
    %11 = vector.broadcast %3 : vector<16x1xf32> to vector<16x128xf32>
    %12 = arith.addf %10, %11 : vector<16x128xf32>
    %cst = arith.constant 0.000000e+00 : f32
    %13 = vector.broadcast %cst : f32 to vector<16x128xf32>
    %14 = arith.maximumf %12, %13 : vector<16x128xf32>
    %c0_3 = arith.constant 0 : index
    %c0_4 = arith.constant 0 : index
    %c0_5 = arith.constant 0 : index
    %15 = vector.load %arg3[%c0_3, %c0_4, %c0_5] : memref<2x16x16xf32, #tpu.memory_space<vmem>>, vector<1x16x16xf32>
    %16 = vector.shape_cast %15 : vector<1x16x16xf32> to vector<16x16xf32>
    %cst_6 = arith.constant dense<0.000000e+00> : vector<16x128xf32>
    %17 = tpu.matmul %16, %14, %cst_6 {dimension_numbers = #tpu.dot_dimension_numbers<[1], [0], [0], [1], [0, 0, 1, 1], [], []>} : vector<16x16xf32>, vector<16x128xf32>, vector<16x128xf32> -> vector<16x128xf32>
    %18 = vector.broadcast %4 : vector<16x1xf32> to vector<16x128xf32>
    %19 = arith.addf %17, %18 : vector<16x128xf32>
    %cst_7 = arith.constant 0.000000e+00 : f32
    %20 = vector.broadcast %cst_7 : f32 to vector<16x128xf32>
    %21 = arith.maximumf %19, %20 : vector<16x128xf32>
    %c1 = arith.constant 1 : index
    %c0_8 = arith.constant 0 : index
    %c0_9 = arith.constant 0 : index
    %22 = vector.load %arg3[%c1, %c0_8, %c0_9] : memref<2x16x16xf32, #tpu.memory_space<vmem>>, vector<1x16x16xf32>
    %23 = vector.shape_cast %22 : vector<1x16x16xf32> to vector<16x16xf32>
    %cst_10 = arith.constant dense<0.000000e+00> : vector<16x128xf32>
    %24 = tpu.matmul %23, %21, %cst_10 {dimension_numbers = #tpu.dot_dimension_numbers<[1], [0], [0], [1], [0, 0, 1, 1], [], []>} : vector<16x16xf32>, vector<16x128xf32>, vector<16x128xf32> -> vector<16x128xf32>
    %25 = vector.broadcast %5 : vector<16x1xf32> to vector<16x128xf32>
    %26 = arith.addf %24, %25 : vector<16x128xf32>
    %cst_11 = arith.constant 0.000000e+00 : f32
    %27 = vector.broadcast %cst_11 : f32 to vector<16x128xf32>
    %28 = arith.maximumf %26, %27 : vector<16x128xf32>
    %29 = vector.broadcast %6 : vector<16x1xf32> to vector<16x128xf32>
    %30 = arith.mulf %29, %28 : vector<16x128xf32>
    %cst_12 = arith.constant dense<0.000000e+00> : vector<128xf32>
    %31 = vector.multi_reduction <add>, %30, %cst_12 [0] : vector<16x128xf32> to vector<128xf32>
    %32 = vector.shape_cast %31 : vector<128xf32> to vector<1x128xf32>
    %33 = vector.broadcast %7 : vector<1x1xf32> to vector<1x128xf32>
    %34 = arith.addf %32, %33 : vector<1x128xf32>
    %c0_13 = arith.constant 0 : index
    %c0_14 = arith.constant 0 : index
    %35 = vector.load %arg4[%c0_13, %c0_14] : memref<1x128xf32, #tpu.memory_space<vmem>>, vector<1x128xf32>
    tpu.vector_store %arg4[%c0_13, %c0_14], %34 {strides = array<i32>} : memref<1x128xf32, #tpu.memory_space<vmem>>, vector<1x128xf32>,
    return
  }
  func.func @transform_0(%arg0: i32) -> (i32, i32) {
    %c0_i32 = arith.constant 0 : i32
    %c0_i32_0 = arith.constant 0 : i32
    return %c0_i32, %arg0 : i32, i32
  }
  func.func @transform_1(%arg0: i32) -> (i32, i32) {
    %c0_i32 = arith.constant 0 : i32
    %c0_i32_0 = arith.constant 0 : i32
    %c0_i32_1 = arith.constant 0 : i32
    return %c0_i32, %c0_i32_0 : i32, i32
  }
  func.func @transform_2(%arg0: i32) -> (i32, i32, i32) {
    %c0_i32 = arith.constant 0 : i32
    %c0_i32_0 = arith.constant 0 : i32
    %c0_i32_1 = arith.constant 0 : i32
    %c0_i32_2 = arith.constant 0 : i32
    return %c0_i32, %c0_i32_0, %c0_i32_1 : i32, i32, i32
  }
  func.func @transform_3(%arg0: i32) -> (i32, i32) {
    %c0_i32 = arith.constant 0 : i32
    %c0_i32_0 = arith.constant 0 : i32
    return %c0_i32, %arg0 : i32, i32
  }
}

</mosaic_0001>

<bundles_post_ra>
// kernel: tpu_custom_call.1
= control target key start
LH: loop header
LB: loop body
LE: loop exit
PB: predicated region body
PF: predicated region fallthrough
CT: control target
= control target key end

     0   :  { %8 = vsyncpa [#allocation3], 0  ;;  %s456_s0 = inlined_call_operand.vmem [shape: f32[1,128], index: 0, kind: input, shape index: {}]   ;;  %s457_s1 = inlined_call_operand.vmem [shape: f32[16,8], index: 1, kind: input, shape index: {}]   ;;  %s458_s2 = inlined_call_operand.hbm [shape: f32[2,16,16], index: 2, kind: input, shape index: {}]   ;;  %s459_s3 = inlined_call_operand.hbm [shape: f32[1,128], index: 3, kind: output, shape index: {}]  }
   0x1   :  { %9 = vsyncpa [#allocation4], 0  ;;  %s389_s12 = smov [#allocation2]   ;;  %s341_s16 = scalar_lea.hbm %s458_s2, 512 }
   0x2   :  { %s19_s13 = sshll.u32 %s389_s12, 4  ;;  %p342_p0 = scmp.ne.s32.totalorder %s458_s2, %s341_s16  ;;  %s20_s13 = int_to_ptr.vmem [resolvable:$true] %s19_s13 }
   0x3   :  { %p345_p1 = scmp.lt.u32.totalorder %s341_s16, %s458_s2 }
   0x5   :  { %p347_p2 = pnand %p345_p1, %p342_p0 }
   0x7   :  { %350 = shalt.err (!%p347_p2)
}
   0x8   :  { %s351_s21 = scalar_lea.vmem %s20_s13, 512  ;;  %p356_p4 = scmp.lt.s32.totalorder %s20_s13, %s20_s13 }
   0x9   :  { %p352_p3 = scmp.ne.s32.totalorder %s20_s13, %s351_s21  ;;  %p357_p5 = scmp.lt.s32.totalorder %s351_s21, %s351_s21 }
   0xb   :  { %p358_p6 = por %p357_p5, %p356_p4 }
   0xd   :  { %p359_p7 = pnand %p358_p6, %p352_p3 }
   0xf   :  { %362 = shalt.err (!%p359_p7)
}
  0x10   :  { %s390_s22 = smov 128   ;;  %s391_s23 = smov 8  }
  0x11   :  { %25 = dma.hbm_to_vmem [thread:$0]  %s458_s2, 512, %s20_s13, [#allocation3], %s390_s22, %s390_s22, %s391_s23  }
  0x12   :  { %385 = dma.done.wait [#allocation3], 512  }
  0x13   :  { %386 = vsyncadd [#allocation3], 4294966784  ;;  %v392_v0 = vmov 1   ;;  %v393_v1 = vmov 0   ;;  %v30_v2 = vld [vmem:[%s457_s1] sm:$0xff]  ;;  %v31_v3 = vld [vmem:[%s457_s1 + $0x8] sm:$0xff] }
  0x14   :  { %334 = vset.pattern.permute.xlu1 %v392_v0  ;;  %333 = vset.pattern.permute.xlu0 %v393_v1  ;;  %v62_v4 = vld [vmem:[#allocation2] sm:$0xff]  ;;  %vm72_vm0 = vcmask 130048   ;;  %v394_v5 = vmov 2   ;;  %v63_v18 = vld [vmem:[#allocation2 + $0x8] sm:$0xff]  ;;  %v157_v19 = vld [vmem:[#allocation2 + $0x10] sm:$0xff]  ;;  %v395_v20 = vmov 3  }
  0x15   :  { %51 = vperm.xlu1 %334, %v30_v2   ;;  %34 = vperm.xlu0 %333, %v30_v2   ;;  %v288_v6 = vld [vmem:[%s456_s0] ss:$0 sm:$0xff]  ;;  %v396_v21 = vmov 4   ;;  %v397_v22 = vmov 5   ;;  %v158_v32 = vld [vmem:[#allocation2 + $0x18] sm:$0xff]  ;;  %s398_s0 = smov [#allocation5]  }
  0x16   :  { %305 = vmatprep.mubr.msk.f32.mxu0 %vm72_vm0, %v62_v4  ;;  %312 = vmatprep.mubr.msk.f32.mxu1 %vm72_vm0, %v157_v19  ;;  %s279_s1 = sshll.u32 %s398_s0, 4  ;;  %s280_s1 = int_to_ptr.vmem [resolvable:$true] %s279_s1 }
  0x17   :  { %s363_s4 = scalar_lea.vmem %s280_s1, 16  ;;  %s367_s5 = scalar_lea.vmem %s280_s1, 32 }
  0x18   :  { %p364_p8 = scmp.ne.s32.totalorder %s280_s1, %s363_s4  ;;  %p368_p9 = scmp.lt.s32.totalorder %s280_s1, %s280_s1 }
  0x19   :  { %55 = vperm.xlu1 %334, %v31_v3   ;;  %39 = vperm.xlu0 %333, %v31_v3   ;;  %p369_p10 = scmp.lt.s32.totalorder %s367_s5, %s363_s4 }
  0x1b   :  { %p370_p11 = por %p369_p10, %p368_p9 }
  0x1d   :  { %336 = vset.pattern.permute.xlu1 %v394_v5  ;;  %335 = vset.pattern.permute.xlu0 %v394_v5  ;;  %p371_p12 = pnand %p370_p11, %p364_p8 }
  0x1e   :  { %69 = vperm.xlu1 %336, %v31_v3   ;;  %65 = vperm.xlu0 %335, %v30_v2  }
  0x22   :  { %337 = vset.pattern.permute.xlu1 %v395_v20  ;;  %338 = vset.pattern.permute.xlu0 %v395_v20 }
  0x23   :  { %160 = vperm.xlu1 %337, %v30_v2   ;;  %164 = vperm.xlu0 %338, %v31_v3  }
  0x27   :  { %339 = vset.pattern.permute.xlu1 %v396_v21  ;;  %340 = vset.pattern.permute.xlu0 %v397_v22 }
  0x28   :  { %251 = vperm.xlu1 %339, %v30_v2   ;;  %268 = vperm.xlu0 %340, %v30_v2  }
  0x2c   :  { %255 = vperm.xlu1 %339, %v31_v3  }
  0x94   :  { %v52_v7 = vpop.permute.xlu1 %51  ;;  %v35_v8 = vpop.permute.xlu0 %34 }
  0x95   :  { %v48_v9 = vmul.f32 %v288_v6, %v35_v8 }
  0x97   :  { %v58_v11 = vadd.f32 %v52_v7, %v48_v9 }
  0x98   :  { %v40_v10 = vpop.permute.xlu0 %39  ;;  %v56_v13 = vpop.permute.xlu1 %55 }
  0x99   :  { %v49_v12 = vmul.f32 %v288_v6, %v40_v10  ;;  %v60_v15 = vmax.f32 %v58_v11, 0.0 }
  0x9b   :  { %v59_v14 = vadd.f32 %v56_v13, %v49_v12 }
  0x9d   :  { %v61_v16 = vmax.f32 %v59_v14, 0.0  ;;  %v70_v23 = vpop.permute.xlu1 %69  ;;  %v66_v24 = vpop.permute.xlu0 %65 }
  0x9f   :  { %v315_v17 = vpack.c.bf16 %v61_v16, %v60_v15 }
  0xa1   :  { %316 = vmatprep.subr.bf16.mxu0 %v315_v17 }
  0xa2   :  { %318 = vmatpush3.bf16.msra.mxu0 %v315_v17  ;;  %v161_v33 = vpop.permute.xlu1 %160  ;;  %v165_v35 = vpop.permute.xlu0 %164 }
  0xa5   :  { %306 = vmatmul.mubr.msk.f32.vlgmr.msra.gmra.mrb[0].mxu0 %vm72_vm0, %v63_v18 }
  0xa7   :  { %v252_v34 = vpop.permute.xlu1 %251  ;;  %v269_v51 = vpop.permute.xlu0 %268 }
  0xab   :  { %v256_v41 = vpop.permute.xlu1 %255 }
 0x178   :  { %v307_v25 = vpop.f32.mrb[0].mxu0 }
 0x179   :  { %v151_v26 = vadd.f32 %v307_v25, %v70_v23  ;;  %v145_v27 = vpop.f32.mrb[1].mxu0 }
 0x17a   :  { %v146_v28 = vadd.f32 %v145_v27, %v66_v24 }
 0x17b   :  { %v155_v29 = vmax.f32 %v151_v26, 0.0 }
 0x17c   :  { %v154_v30 = vmax.f32 %v146_v28, 0.0 }
 0x17e   :  { %v319_v31 = vpack.c.bf16 %v155_v29, %v154_v30 }
 0x180   :  { %320 = vmatprep.subr.bf16.mxu1 %v319_v31 }
 0x181   :  { %322 = vmatpush3.bf16.msra.mxu1 %v319_v31 }
 0x184   :  { %313 = vmatmul.mubr.msk.f32.vlgmr.msra.gmra.mrb[0].mxu1 %vm72_vm0, %v158_v32 }
 0x257   :  { %v314_v36 = vpop.f32.mrb[0].mxu1 }
 0x258   :  { %v245_v37 = vadd.f32 %v314_v36, %v165_v35  ;;  %v239_v38 = vpop.f32.mrb[1].mxu1 }
 0x259   :  { %v240_v39 = vadd.f32 %v239_v38, %v161_v33 }
 0x25a   :  { %v249_v40 = vmax.f32 %v245_v37, 0.0 }
 0x25b   :  { %v248_v42 = vmax.f32 %v240_v39, 0.0 }
 0x25c   :  { %v259_v43 = vmul.f32 %v256_v41, %v249_v40 }
 0x25d   :  { %v258_v44 = vmul.f32 %v252_v34, %v248_v42 }
 0x25f   :  { %v260_v45 = vadd.f32 %v259_v43, %v258_v44 }
 0x261   :  { %v261_v46 = vrot.slane %v260_v45, 4 }
 0x263   :  { %v262_v47 = vadd.f32 %v261_v46, %v260_v45 }
 0x265   :  { %v263_v48 = vrot.slane %v262_v47, 2 }
 0x267   :  { %v264_v49 = vadd.f32 %v263_v48, %v262_v47 }
 0x269   :  { %v265_v50 = vrot.slane %v264_v49, 1 }
 0x26b   :  { %v266_v52 = vadd.f32 %v265_v50, %v264_v49 }
 0x26d   :  { %v271_v53 = vadd.f32 %v269_v51, %v266_v52 }
 0x26f   :  { %272 = vst [vmem:[#allocation5] sm:$0x1] %v271_v53 }
 0x270   :  { %374 = shalt.err (!%p371_p12)
}
 0x271   :  { %s375_s8 = scalar_lea.hbm %s459_s3, 16 }
 0x272   :  { %p376_p13 = scmp.ne.s32.totalorder %s459_s3, %s375_s8  ;;  %p379_p0 = scmp.lt.u32.totalorder %s375_s8, %s459_s3 }
 0x274   :  { %p381_p1 = pnand %p379_p0, %p376_p13 }
 0x276   :  { %384 = shalt.err (!%p381_p1)
}
 0x277   :  { %282 = dma.vmem_to_hbm [thread:$0]  %s280_s1, 16, %s459_s3, [#allocation4]  }
 0x278   :  { %387 = dma.done.wait [#allocation4], 16  }
 0x279   :  { %388 = vsyncadd [#allocation4], 4294967280 }
 0x27a   :  { %286 = vsyncpa [#allocation3], 1 }
 0x27b   :  { %287 = vsyncpa [#allocation4], 1 }

</bundles_post_ra>
